<compile_context>
chip_gen: v7x
topology: tpu7x:2x2x1
jax: 0.10.0
libtpu: 0.0.40
codegen_flags: <defaults>
</compile_context>

<pallas_src>
import functools

import jax
import jax.numpy as jnp
from jax.experimental import pallas as pl
from jax.experimental.pallas import tpu as pltpu


def _cdiv(a, m):
    return (a + m - 1) // m


def _round_up(a, m):
    return _cdiv(a, m) * m


def _round_down(a, m):
    return a // m * m


def _cross_map_lrn_kernel(band_ref, x_ref, o_ref, *, beta, k, c_out):
    # band_ref: (cp, cp) f32 banded window matrix, alpha/size folded in.
    # x_ref:    (1, cp, t_hw) input tile (channels on sublanes, spatial on lanes).
    # o_ref:    (1, c_out, t_hw) output tile.
    xf = x_ref[0].astype(jnp.float32)                         # (cp, t)
    sq = xf * xf
    # Cross-channel window sum on the otherwise idle MXU: no masks, no rolls.
    acc = jnp.dot(band_ref[...], sq, preferred_element_type=jnp.float32)
    scale = k + acc                                           # alpha/size is in `band`

    # scale^(-beta): EUP-cheap rsqrt/sqrt chains for the common betas.
    if abs(beta - 0.75) < 1e-12:
        r = jax.lax.rsqrt(scale)                              # s^-1/2
        mult = r * jnp.sqrt(r)                                # s^-3/4
    elif abs(beta - 0.5) < 1e-12:
        mult = jax.lax.rsqrt(scale)
    elif abs(beta - 1.0) < 1e-12:
        mult = 1.0 / scale
    else:
        mult = jnp.exp(-beta * jnp.log(jnp.maximum(scale, 1e-30)))

    out = xf * mult                                           # (cp, t)
    o_ref[0] = out[:c_out].astype(o_ref.dtype)                # drop padded channels


def cross_map_lrn2d(x, size, alpha=1e-4, beta=0.75, k=1.0):
    """Pallas CrossMapLRN2d forward. x: (N, C, H, W)."""
    N, C, H, W = x.shape
    HW = H * W
    size = int(size)
    half_lo = (size - 1) // 2
    half_hi = size - 1 - half_lo

    itemsize = jnp.dtype(x.dtype).itemsize

    # Channel (sublane) padding only when C is not 8-aligned; spatial is never
    # padded unless HW < one lane tile (tiny tensors, negligible copy).
    cp = _round_up(C, 8)
    L = HW if HW >= 128 else 128

    # Generation-aware VMEM budget (v7x: 64 MiB per TC, v5e/v6e: 128 MiB).
    try:
        phys_vmem = int(pltpu.get_tpu_info().vmem_capacity_bytes)
    except Exception:  # conservative fallback = smallest generation (v7x)
        phys_vmem = 64 * 1024 * 1024
    vmem_limit = max(32 * 1024 * 1024, min(phys_vmem * 3 // 4, 96 * 1024 * 1024))

    # Lane tile: ~4 MiB of input per block (dtype aware), clamped so the
    # 2x in + 2x out double buffers plus ~5 f32 temporaries fit under budget.
    target_block_bytes = 4 * 1024 * 1024
    bytes_per_lane = (2 * cp + 2 * C) * itemsize + 5 * cp * 4
    t_by_vmem = _round_down((vmem_limit * 85 // 100) // bytes_per_lane, 128)
    t_by_target = _round_down(max(target_block_bytes // (cp * itemsize), 128), 128)
    lane_cap = _round_down(L, 128)
    t_hw = max(128, min(t_by_vmem, t_by_target, lane_cap))

    # v7x megacore: keep at least 2 grid steps so both TensorCores get work.
    if N * _cdiv(L, t_hw) < 2 and L > 128:
        t_hw = min(t_hw, _round_up(_cdiv(L, 2), 128))

    xr = x.reshape(N, C, HW)
    if cp != C or L != HW:
        xr = jnp.pad(xr, ((0, 0), (0, cp - C), (0, L - HW)))

    # Banded 0/(alpha/size) window matrix: acc = band @ x^2 gives the clipped
    # cross-map window sum already scaled by alpha/size.
    ch = jnp.arange(cp, dtype=jnp.int32)
    i = ch[:, None]
    j = ch[None, :]
    in_win = (j >= i - half_lo) & (j <= i + half_hi) & (j < C)
    band = jnp.where(in_win, jnp.float32(alpha / size), jnp.float32(0.0))

    kern = functools.partial(
        _cross_map_lrn_kernel, beta=float(beta), k=float(k), c_out=C)

    out = pl.pallas_call(
        kern,
        out_shape=jax.ShapeDtypeStruct((N, C, L), x.dtype),
        grid_spec=pltpu.PrefetchScalarGridSpec(
            num_scalar_prefetch=0,
            grid=(N, _cdiv(L, t_hw)),
            in_specs=[
                pl.BlockSpec((cp, cp), lambda n, s: (0, 0)),        # fetched once
                pl.BlockSpec((1, cp, t_hw), lambda n, s: (n, 0, s)),
            ],
            out_specs=pl.BlockSpec((1, C, t_hw), lambda n, s: (n, 0, s)),
        ),
        compiler_params=pltpu.CompilerParams(
            dimension_semantics=("parallel", "parallel"),
            vmem_limit_bytes=int(vmem_limit)),
    )(band, xr)

    if L != HW:
        out = out[:, :, :HW]
    return out.reshape(N, C, H, W)


def _reference_lrn(x, size, alpha, beta, k):
    # Pure-JAX reference with identical window semantics.
    N, C, H, W = x.shape
    xf = x.astype(jnp.float32)
    sq = xf * xf
    half_lo = (size - 1) // 2
    half_hi = size - 1 - half_lo
    padded = jnp.pad(sq, ((0, 0), (half_lo, half_hi), (0, 0), (0, 0)))
    acc = sum(padded[:, d:d + C] for d in range(size))
    scale = k + (alpha / size) * acc
    return (xf / scale ** beta).astype(x.dtype)


if __name__ == "__main__":
    key = jax.random.PRNGKey(0)
    k1, k2, k3 = jax.random.split(key, 3)

    # Primary config: CrossMapLRN2d(size=3) with defaults; C=4 exercises the
    # channel-pad path (4 -> 8), HW=256 the no-spatial-pad path.
    x = jax.random.normal(k1, (2, 4, 16, 16), dtype=jnp.float32)
    y = jax.block_until_ready(cross_map_lrn2d(x, size=3))
    y_ref = _reference_lrn(x, 3, 1e-4, 0.75, 1.0)
    assert y.shape == x.shape and y.dtype == x.dtype
    assert jnp.allclose(y, y_ref, atol=1e-5, rtol=1e-5)

    # Sublane-aligned fast path (C % 8 == 0, zero padding anywhere), size=5.
    x2 = jax.random.normal(k2, (2, 16, 8, 8), dtype=jnp.float32)
    y2 = jax.block_until_ready(cross_map_lrn2d(x2, size=5))
    y2_ref = _reference_lrn(x2, 5, 1e-4, 0.75, 1.0)
    assert y2.shape == x2.shape and y2.dtype == x2.dtype
    assert jnp.allclose(y2, y2_ref, atol=1e-5, rtol=1e-5)

    # Ragged shape: C=6 -> 8, HW=63 -> 128, larger window, non-default alpha/k.
    x3 = jax.random.normal(k3, (1, 6, 7, 9), dtype=jnp.float32)
    y3 = jax.block_until_ready(
        cross_map_lrn2d(x3, size=5, alpha=2e-4, beta=0.75, k=2.0))
    y3_ref = _reference_lrn(x3, 5, 2e-4, 0.75, 2.0)
    assert y3.shape == x3.shape and y3.dtype == x3.dtype
    assert jnp.allclose(y3, y3_ref, atol=1e-5, rtol=1e-5)

    print("KERNEL_OK")
</pallas_src>

<mosaic_0001>
module attributes {stable_mosaic.version = 11 : i64} {
  func.func @_cross_map_lrn_kernel(%arg0: i32, %arg1: i32, %arg2: memref<8x8xf32, #tpu.memory_space<vmem>>, %arg3: memref<1x8x256xf32, #tpu.memory_space<vmem>>, %arg4: memref<1x4x256xf32, #tpu.memory_space<vmem>>) attributes {dimension_semantics = [#tpu.dimension_semantics<parallel>, #tpu.dimension_semantics<parallel>], iteration_bounds = array<i64: 2, 1>, scalar_prefetch = 0 : i64, scratch_operands = 0 : i64, tpu.core_type = #tpu.core_type<tc>, window_params = [{pipeline_mode = #tpu.pipeline_mode<synchronous>, transform_indices = @transform_0, window_bounds = array<i64: 8, 8>}, {transform_indices = @transform_1, window_bounds = array<i64: 1, 8, 256>}, {transform_indices = @transform_2, window_bounds = array<i64: 1, 4, 256>}]} {
    %c0 = arith.constant 0 : index
    %c0_0 = arith.constant 0 : index
    %c0_1 = arith.constant 0 : index
    %0 = vector.load %arg3[%c0, %c0_0, %c0_1] : memref<1x8x256xf32, #tpu.memory_space<vmem>>, vector<1x8x256xf32>
    %1 = vector.shape_cast %0 : vector<1x8x256xf32> to vector<8x256xf32>
    %2 = arith.mulf %1, %1 : vector<8x256xf32>
    %c0_2 = arith.constant 0 : index
    %c0_3 = arith.constant 0 : index
    %3 = vector.load %arg2[%c0_2, %c0_3] : memref<8x8xf32, #tpu.memory_space<vmem>>, vector<8x8xf32>
    %cst = arith.constant dense<0.000000e+00> : vector<8x256xf32>
    %4 = tpu.matmul %3, %2, %cst {dimension_numbers = #tpu.dot_dimension_numbers<[1], [0], [0], [1], [0, 0, 1, 1], [], []>} : vector<8x8xf32>, vector<8x256xf32>, vector<8x256xf32> -> vector<8x256xf32>
    %cst_4 = arith.constant 1.000000e+00 : f32
    %5 = vector.broadcast %cst_4 : f32 to vector<8x256xf32>
    %6 = arith.addf %5, %4 : vector<8x256xf32>
    %7 = math.rsqrt %6 : vector<8x256xf32>
    %8 = math.sqrt %7 : vector<8x256xf32>
    %9 = arith.mulf %7, %8 : vector<8x256xf32>
    %10 = arith.mulf %1, %9 : vector<8x256xf32>
    %11 = vector.extract_strided_slice %10 {offsets = [0, 0], sizes = [4, 256], strides = [1, 1]} : vector<8x256xf32> to vector<4x256xf32>
    %c0_5 = arith.constant 0 : index
    %c0_6 = arith.constant 0 : index
    %c0_7 = arith.constant 0 : index
    %12 = vector.load %arg4[%c0_5, %c0_6, %c0_7] : memref<1x4x256xf32, #tpu.memory_space<vmem>>, vector<1x4x256xf32>
    %13 = vector.shape_cast %12 : vector<1x4x256xf32> to vector<4x256xf32>
    %14 = vector.shape_cast %11 : vector<4x256xf32> to vector<1x4x256xf32>
    tpu.vector_store %arg4[%c0_5, %c0_6, %c0_7], %14 {strides = array<i32>} : memref<1x4x256xf32, #tpu.memory_space<vmem>>, vector<1x4x256xf32>,
    return
  }
  func.func @transform_0(%arg0: i32, %arg1: i32) -> (i32, i32) {
    %c0_i32 = arith.constant 0 : i32
    %c0_i32_0 = arith.constant 0 : i32
    %c0_i32_1 = arith.constant 0 : i32
    return %c0_i32, %c0_i32_0 : i32, i32
  }
  func.func @transform_1(%arg0: i32, %arg1: i32) -> (i32, i32, i32) {
    %c0_i32 = arith.constant 0 : i32
    %c0_i32_0 = arith.constant 0 : i32
    return %arg0, %c0_i32, %arg1 : i32, i32, i32
  }
  func.func @transform_2(%arg0: i32, %arg1: i32) -> (i32, i32, i32) {
    %c0_i32 = arith.constant 0 : i32
    %c0_i32_0 = arith.constant 0 : i32
    return %arg0, %c0_i32, %arg1 : i32, i32, i32
  }
}

</mosaic_0001>

<bundles_post_ra>
// kernel: tpu_custom_call.1
= control target key start
LH: loop header
LB: loop body
LE: loop exit
PB: predicated region body
PF: predicated region fallthrough
CT: control target
= control target key end

     0   :  { %7 = vsyncpa [#allocation3], 0  ;;  %s895_s0 = inlined_call_operand.hbm [shape: f32[8,8], index: 0, kind: input, shape index: {}]   ;;  %s896_s1 = inlined_call_operand.hbm [shape: f32[2,8,256], index: 1, kind: input, shape index: {}]   ;;  %s897_s2 = inlined_call_operand.hbm [shape: f32[2,4,256], index: 2, kind: output, shape index: {}]  }
   0x1   :  { %8 = vsyncpa [#allocation6], 0 }
   0x2   :  { %10 = vsyncpa [#allocation6 + $0x1], 0 }
   0x3   :  { %11 = vsyncpa [#allocation4], 0 }
   0x4   :  { %13 = vsyncpa [#allocation4 + $0x1], 0  ;;  %s678_s9 = smov 0   ;;  %s680_s10 = smov 0  }
   0x5   :  { %s682_s11 = smov 0   ;;  %s684_s12 = smov 0  }
   0x6   :  { %s686_s13 = smov 0   ;;  %s688_s14 = smov 0  }
   0x7 LB: > { %s411_s15 = sadd.s32 4294967295, %s657_s14   ;;  %s412_s16 = sadd.s32 4294967294, %s657_s14   ;;  %s657_s14 = sphi %s688_s14, %s19_s14   ;;  %s653_s13 = sphi %s686_s13, %s922_s13   ;;  %s649_s12 = sphi %s684_s12, %s921_s12   ;;  %s645_s11 = sphi %s682_s11, %s920_s11   ;;  %s641_s10 = sphi %s680_s10, %s919_s10   ;;  %s637_s9 = sphi %s678_s9, %s918_s9  }
   0x8   : > { %p74_p0 = scmp.ne.s32.totalorder %s641_s10, %s637_s9  ;;  %p712_p1 = scmp.eq.s32.totalorder %s411_s15, 0 }
   0x9   : > { %p716_p2 = scmp.eq.s32.totalorder %s411_s15, 1  ;;  %p106_p3 = scmp.eq.s32.totalorder %s412_s16, 1 }
   0xa   : > { %s902_s17 = scalar_select %p712_p1, 1, 0 }
   0xb   : > { %s903_s18 = scalar_select %p716_p2, 1, 0 }
   0xc   : > { %p722_p4 = por %p712_p1, %p74_p0  ;;  %p413_p5 = scmp.ge.s32.totalorder %s657_s14, 1 }
   0xd   : > { %p727_p6 = por %p106_p3, %p74_p0  ;;  %p113_p7 = scmp.lt.s32.totalorder %s657_s14, 3 }
   0xe   : > { %s904_s19 = scalar_select %p722_p4, 1, 0 }
   0xf   : > { %s905_s20 = scalar_select %p727_p6, 1, 0 }
  0x10   : > { %p732_p8 = pnand %p413_p5, %p113_p7  ;;  %s659_s22 = smov [#allocation2]  }
  0x11   : > { %s126_s23 = sshll.u32 %s659_s22, 4  ;;  %s31_s25 = sadd.s32 1, %s653_s13  ;;  %s127_s23 = int_to_ptr.vmem [resolvable:$true] %s126_s23 }
  0x12   : > { %s906_s21 = scalar_select %p732_p8, 1, 0 }
  0x13   : > { %p439_p10 = pneg %p732_p8  ;;  %s61_s26 = sadd.s32 1, %s645_s11 }
  0x14   : > { %p747_p12 = scmp.ge.s32.totalorder %s31_s25, 2  ;;  %s513_s30 = scalar_lea.hbm %s895_s0, 128 }
  0x15   : > { %p741_p11 = pnand %p439_p10, %p712_p1  ;;  %p514_p13 = scmp.ne.s32.totalorder %s895_s0, %s513_s30 }
  0x16   : > { %s908_s27 = scalar_select %p747_p12, 1, 0 }
  0x17   : > { %p515_p0 = pneg %p741_p11  ;;  %p520_p7 = scmp.lt.u32.totalorder %s513_s30, %s895_s0 }
  0x19   : > { %p516_p3 = pnand %p515_p0, %p514_p13 }
  0x1b   : > { %p517_p5 = pneg %p516_p3 }
  0x1d   : > { %p522_p10 = pnand %p520_p7, %p517_p5 }
  0x1f   : > { %525 = shalt.err (!%p522_p10)
}
  0x20   : > { %s526_s7 = scalar_lea.vmem %s127_s23, 128  ;;  %p534_p1 = scmp.lt.s32.totalorder %s127_s23, %s127_s23 }
  0x21   : > { %p527_p9 = scmp.ne.s32.totalorder %s127_s23, %s526_s7  ;;  %p535_p8 = scmp.lt.s32.totalorder %s526_s7, %s526_s7 }
  0x23   : > { %p529_p6 = pnand %p527_p9, %p515_p0  ;;  %p536_p2 = por %p535_p8, %p534_p1 }
  0x25   : > { %p530_p4 = pneg %p529_p6 }
  0x27   : > { %p537_p12 = pnand %p536_p2, %p530_p4 }
  0x29   : > { %540 = shalt.err (!%p537_p12)
}
  0x2a   : > { %442 = dma.hbm_to_vmem [thread:$0]  (!%p741_p11), %s895_s0, 128, %s127_s23, [#allocation3]  }
  0x2b   : > { %p909_p1 = scmp.ne.s32.totalorder %s908_s27, 0  ;;  %p68_p2 = scmp.ne.s32.totalorder %s645_s11, %s641_s10 }
  0x2c   : > { %p69_p4 = scmp.eq.s32.totalorder %s657_s14, 0  ;;  %p452_p6 = scmp.lt.s32.totalorder %s657_s14, 2 }
  0x2d   : > { %s924_s25 = smov (%p909_p1, %s31_s25), 0  ;;  %p910_p12 = scmp.ne.s32.totalorder %s903_s18, 0 }
  0x2e   : > { %s56_s16 = ssub.s32 %s653_s13, %s924_s25  ;;  %p70_p9 = por %p69_p4, %p68_p2 }
  0x2f   : > { %p59_p8 = scmp.eq.s32.totalorder %s56_s16, 0  ;;  %p779_p13 = por %p910_p12, %p68_p2 }
  0x30   : > { %s137_s24 = sand.u32 1, %s645_s11   ;;  %s429_s27 = sshll.u32 %s653_s13, 8 }
  0x31   : > { %s787_s28 = scalar_select %p59_p8, %s645_s11, %s61_s26  }
  0x32   : > { %s416_s23 = sshll.u32 %s137_s24, 4  ;;  %s793_s3 = scalar_lea.hbm %s896_s1, %s429_s27 }
  0x33   : > { %s141_s18 = scalar_lea.vmem [#allocation5], %s416_s23  ;;  %p797_p11 = pnand %p452_p6, %p70_p9 }
  0x34   : > { %s151_s4 = sshll.u32 %s141_s18, 4  ;;  %s138_s26 = scalar_lea.sflag [#allocation6], %s137_s24  ;;  %s795_s4 = int_to_ptr.vmem [resolvable:$true] %s151_s4 }
  0x35   : > { %s541_s6 = scalar_lea.hbm %s793_s3, 256  ;;  %p543_p3 = pneg %p797_p11 }
  0x36   : > { %p542_p0 = scmp.ne.s32.totalorder %s793_s3, %s541_s6  ;;  %s546_s15 = scalar_lea.hbm %s896_s1, 512 }
  0x37   : > { %p547_p10 = scmp.lt.u32.totalorder %s793_s3, %s896_s1  ;;  %p548_p1 = scmp.lt.u32.totalorder %s546_s15, %s541_s6 }
  0x38   : > { %p544_p5 = pnand %p543_p3, %p542_p0  ;;  %p550_p4 = scmp.lt.u32.totalorder %s541_s6, %s793_s3 }
  0x39   : > { %p549_p2 = por %p548_p1, %p547_p10 }
  0x3a   : > { %p545_p7 = pneg %p544_p5 }
  0x3b   : > { %p551_p6 = por %p550_p4, %p549_p2 }
  0x3d   : > { %p552_p8 = pnand %p551_p6, %p545_p7 }
  0x3f   : > { %555 = shalt.err (!%p552_p8)
}
  0x40   : > { %s556_s24 = scalar_lea.vmem %s795_s4, 256  ;;  %s660_s27 = smov [#allocation5]  }
  0x41   : > { %p557_p9 = scmp.ne.s32.totalorder %s795_s4, %s556_s24  ;;  %s561_s29 = sshll.u32 %s660_s27, 4  ;;  %s562_s29 = int_to_ptr.vmem [resolvable:$false] %s561_s29 }
  0x42   : > { %s563_s30 = scalar_lea.vmem %s562_s29, 512  ;;  %p564_p5 = scmp.lt.s32.totalorder %s795_s4, %s562_s29 }
  0x43   : > { %p559_p12 = pnand %p557_p9, %p543_p3  ;;  %p565_p10 = scmp.lt.s32.totalorder %s563_s30, %s556_s24 }
  0x45   : > { %p560_p0 = pneg %p559_p12  ;;  %p566_p1 = por %p565_p10, %p564_p5 }
  0x47   : > { %p567_p2 = pnand %p566_p1, %p560_p0 }
  0x49   : > { %570 = shalt.err (!%p567_p2)
}
  0x4a   : > { %446 = dma.hbm_to_vmem [thread:$0]  (!%p797_p11), %s793_s3, 256, %s795_s4, %s138_s26  }
  0x4b   : > { %p913_p7 = scmp.ne.s32.totalorder %s906_s21, 0 }
  0x4c   : > { %p914_p3 = scmp.ne.s32.totalorder (!%p913_p7), %s902_s17, 0 }
  0x4d   : > { %160 = sbr.rel (%p913_p7) target bundleno = 355 (0x163), region = 28 }
  0x54   : > { %624 = dma.done.wait (%p914_p3), [#allocation3], 128  }
  0x55   : > { %626 = vsyncadd (%p914_p3), [#allocation3], 4294967168  ;;  %s833_s18 = sand.u32 1, %s641_s10   ;;  %p915_p4 = scmp.ne.s32.totalorder %s904_s19, 0 }
  0x56   : > { %s421_s6 = sshll.u32 %s833_s18, 4  ;;  %s167_s5 = scalar_lea.sflag [#allocation6], %s833_s18 }
  0x57   : > { %s170_s7 = scalar_lea.vmem [#allocation5], %s421_s6 }
  0x58   : > { %628 = dma.done.wait (%p915_p4), %s167_s5, 256  }
  0x59   : > { %630 = vsyncadd (%p915_p4), %s167_s5, 4294967040  ;;  %v661_v0 = vmov 0.0   ;;  %v194_v1 = vld [vmem:[%s170_s7 + $0x8] sm:$0xff]  ;;  %v193_v2 = vld [vmem:[%s170_s7] sm:$0xff]  ;;  %vm198_vm0 = vcmask 64512   ;;  %s422_s17 = sshll.u32 %s833_s18, 3 }
  0x5a   : > { %266 = vmatprep.mubr.f32.mxu0 %v661_v0  ;;  %v196_v3 = vmul.f32 %v194_v1, %v194_v1  ;;  %v195_v4 = vmul.f32 %v193_v2, %v193_v2  ;;  %v197_v5 = vld [vmem:[#allocation2] sm:$0xff]  ;;  %s430_s19 = sshll.u32 %s649_s12, 7  ;;  %s190_s21 = scalar_lea.vmem [#allocation7], %s422_s17 }
  0x5b   : > { %s315_s3 = sshll.u32 %s190_s21, 4  ;;  %s846_s8 = scalar_lea.hbm %s897_s2, %s430_s19  ;;  %s848_s3 = int_to_ptr.vmem [resolvable:$true] %s315_s3 }
  0x5c   : > { %202 = vmatprep.subr.mxu0 %v196_v3  ;;  %s299_s15 = scalar_lea.sflag [#allocation4], %s833_s18  ;;  %s571_s16 = scalar_lea.vmem %s848_s3, 128 }
  0x5d   : > { %203 = vmatpush1.msra.mxu0 %v195_v4  ;;  %p572_p11 = scmp.ne.s32.totalorder %s848_s3, %s571_s16  ;;  %s662_s12 = smov [#allocation7]  }
  0x5e   : > { %423 = vmatmul.mubr.msk.f32.vlgmr.msra.gmra.mrb[0].mxu0 %vm198_vm0, %v197_v5  ;;  %s575_s23 = sshll.u32 %s662_s12, 4  ;;  %s576_s23 = int_to_ptr.vmem [resolvable:$false] %s575_s23 }
  0x5f   : > { %p573_p6 = pnand %p572_p11, %p779_p13  ;;  %s577_s24 = scalar_lea.vmem %s576_s23, 256 }
  0x60   : > { %p578_p9 = scmp.lt.s32.totalorder %s848_s3, %s576_s23  ;;  %p579_p12 = scmp.lt.s32.totalorder %s577_s24, %s571_s16 }
  0x61   : > { %p574_p8 = pneg %p573_p6 }
  0x62   : > { %p580_p0 = por %p579_p12, %p578_p9 }
  0x64   : > { %p581_p5 = pnand %p580_p0, %p574_p8 }
 0x131   : > { %v268_v6 = vpop.f32.mrb[0].mxu0 }
 0x132   : > { %v269_v7 = vadd.f32 1.0, %v268_v6  ;;  %v270_v8 = vpop.f32.mrb[1].mxu0 }
 0x133   : > { %v271_v9 = vadd.f32 1.0, %v270_v8 }
 0x134   : > { %505 = vrsqrt.f32 %v269_v7 }
 0x135   : > { %507 = vrsqrt.f32 %v271_v9 }
 0x13e   : > { %v506_v10 = vpop.eup %505 }
 0x13f   : > { %v508_v11 = vpop.eup %507  ;;  %509 = vrsqrt.f32 %v506_v10  ;;  %vm277_vm1 = vcmp.eq.f32.partialorder %v506_v10, inf  ;;  %v280_v15 = vand.u32 2147483648, %v506_v10  ;;  %vm279_vm2 = vcmp.eq.f32.partialorder %v506_v10, 0.0 }
 0x140   : > { %511 = vrsqrt.f32 %v508_v11  ;;  %vm284_vm3 = vcmp.eq.f32.partialorder %v508_v11, inf  ;;  %v287_v18 = vand.u32 2147483648, %v508_v11  ;;  %vm286_vm4 = vcmp.eq.f32.partialorder %v508_v11, 0.0 }
 0x149   : > { %v510_v12 = vpop.eup %509 }
 0x14a   : > { %v512_v13 = vpop.eup %511  ;;  %v276_v14 = vmul.f32 %v510_v12, %v506_v10 }
 0x14b   : > { %v283_v16 = vmul.f32 %v512_v13, %v508_v11 }
 0x14c   : > { %v278_v17 = vsel %vm277_vm1, %v506_v10, %v276_v14 }
 0x14d   : > { %v281_v19 = vsel %vm279_vm2, %v280_v15, %v278_v17  ;;  %v285_v20 = vsel %vm284_vm3, %v508_v11, %v283_v16 }
 0x14e   : > { %v288_v21 = vsel %vm286_vm4, %v287_v18, %v285_v20  ;;  %v289_v22 = vmul.f32 %v506_v10, %v281_v19 }
 0x14f   : > { %v290_v23 = vmul.f32 %v508_v11, %v288_v21 }
 0x150   : > { %v291_v24 = vmul.f32 %v289_v22, %v193_v2 }
 0x151   : > { %v292_v25 = vmul.f32 %v290_v23, %v194_v1 }
 0x153   : > { %v295_v26 = vcombine.low %v291_v24, %v292_v25 }
 0x155   : > { %297 = vst [vmem:[%s190_s21] sm:$0xff] %v295_v26 }
 0x156   : > { %584 = shalt.err (!%p581_p5)
}
 0x157   : > { %s585_s27 = scalar_lea.hbm %s846_s8, 128  ;;  %s589_s18 = scalar_lea.hbm %s897_s2, 256 }
 0x158   : > { %p586_p10 = scmp.ne.s32.totalorder %s846_s8, %s585_s27  ;;  %p590_p7 = scmp.lt.u32.totalorder %s846_s8, %s897_s2 }
 0x159   : > { %p591_p3 = scmp.lt.u32.totalorder %s589_s18, %s585_s27  ;;  %p593_p11 = scmp.lt.u32.totalorder %s585_s27, %s846_s8 }
 0x15a   : > { %p587_p1 = pnand %p586_p10, %p779_p13 }
 0x15b   : > { %p592_p4 = por %p591_p3, %p590_p7 }
 0x15c   : > { %p588_p2 = pneg %p587_p1 }
 0x15d   : > { %p594_p6 = por %p593_p11, %p592_p4 }
 0x15f   : > { %p595_p8 = pnand %p594_p6, %p588_p2 }
 0x161   : > { %598 = shalt.err (!%p595_p8)
}
 0x162   : > { %437 = dma.vmem_to_hbm [thread:$0]  (%p779_p13), %s848_s3, 128, %s846_s8, %s299_s15  }
 0x163 PF: > { %s327_s7 = sand.u32 1, %s637_s9   ;;  %p916_p9 = scmp.ne.s32.totalorder %s905_s20, 0 }
 0x164   : > { %p917_p12 = scmp.ge.s32.totalorder %s657_s14, 2  ;;  %s328_s17 = scalar_lea.sflag [#allocation4], %s327_s7 }
 0x166   : > { %p448_p0 = pnand %p917_p12, %p916_p9 }
 0x168   : > { %632 = dma.done.wait (!%p448_p0), %s328_s17, 128  }
 0x169   : > { %634 = vsyncadd (!%p448_p0), %s328_s17, 4294967168  ;;  %s19_s14 = sadd.s32 1, %s657_s14   ;;  %s918_s9 = smov %s641_s10 }
 0x16a   : > { %p16_p5 = scmp.ge.s32.totalorder %s19_s14, 4   ;;  %s919_s10 = smov %s645_s11 }
 0x16b   : > { %s920_s11 = smov %s787_s28  ;;  %s921_s12 = smov %s653_s13 }
 0x16c   : > { %s922_s13 = smov %s924_s25  ;;  %18 = sbr.rel (!%p16_p5) target bundleno = 7 (0x7), region = 78 }
 0x173   :  { %333 = vsyncpa [#allocation3], 1 }
 0x174   :  { %335 = vsyncpa [#allocation3 + $0x1], 1 }
 0x175   :  { %336 = vsyncpa [#allocation6], 1 }
 0x176   :  { %338 = vsyncpa [#allocation6 + $0x1], 1 }
 0x177   :  { %339 = vsyncpa [#allocation4], 1 }
 0x178   :  { %341 = vsyncpa [#allocation4 + $0x1], 1 }

</bundles_post_ra>
